<compile_context>
chip_gen: v5e
topology: v5e:2x2
jax: 0.10.0
libtpu: 0.0.40
codegen_flags: <defaults>
</compile_context>

<pallas_src>
import functools

import jax
import jax.numpy as jnp
from jax.experimental import pallas as pl
from jax.experimental.pallas import tpu as pltpu

_LANE = 128  # lane-dense padding of the conv2 output-channel dim


@functools.partial(jax.jit, static_argnames=("stride", "padding"))
def cnn2layers_forward(x, w1, b1, w2, b2, *, stride=1, padding=1):
    """x: (N, C_in, L) float32; weights in PyTorch Conv1d layout (C_out, C_in, K)."""
    if stride != 1:
        raise NotImplementedError("kernel assumes stride=1")
    N, Cin, L = x.shape
    F, _, K = w1.shape
    C2, _, K2 = w2.shape
    assert K2 == K, "both convs in CNN2Layers share kernel_size"
    assert C2 <= _LANE
    P = padding

    L1 = L + 2 * P - K + 1        # conv1 output length (PyTorch formula, stride=1)
    L2 = L1 + 2 * P - K + 1       # conv2 / final output length
    L1p = L1 + 2 * P              # hidden length incl. conv2's zero padding
    assert L1 >= 1 and L2 >= 1

    NR = N * L1p                  # batch-folded hidden rows
    LOUT = NR - K + 1             # batch-folded conv2 sliding-window rows
    KC = K * Cin + 1              # im2col width incl. the ones/bias column
    KCP = -(-KC // 8) * 8         # zero-pad contraction dim to a sublane multiple

    # --- wrapper glue (fused under this jit) -------------------------------
    # conv1 im2col, channels-last, batch folded into rows, bias column folded in.
    x_nlc = jnp.transpose(x, (0, 2, 1))                               # (N, L, Cin)
    x_pad = jnp.pad(x_nlc, ((0, 0), (P, P), (0, 0)))                  # (N, L+2P, Cin)
    cols = jnp.concatenate([x_pad[:, k:k + L1, :] for k in range(K)], axis=-1)
    cols = jnp.concatenate([cols, jnp.ones((N, L1, 1), x.dtype)], axis=-1)
    # P zero rows each side == conv2's zero padding of the hidden (bias column is
    # zero there too -> h=0 -> ELU(0)=0); lane-pad KC -> KCP for a clean contraction.
    cols = jnp.pad(cols, ((0, 0), (P, P), (0, KCP - KC)))             # (N, L1p, KCP)
    xcols = cols.reshape(NR, KCP)                                     # (NR, KCP)

    # conv1 weight + bias as one (KCP, F) operand; row order k*Cin + c matches cols.
    w1_rows = jnp.transpose(w1, (2, 1, 0)).reshape(K * Cin, F)        # (K*Cin, F)
    w1_aug = jnp.concatenate([w1_rows, b1.reshape(1, F)], axis=0)     # (K*Cin+1, F)
    w1_aug = jnp.pad(w1_aug, ((0, KCP - KC), (0, 0)))                 # (KCP, F)

    # conv2 weight taps (lane-padded C2->128) + bias packed into one buffer.
    w2_rows = jnp.transpose(w2, (2, 1, 0)).reshape(K * F, C2)         # (K*F, C2)
    w2_aug = jnp.concatenate([w2_rows, b2.reshape(1, C2)], axis=0)    # (K*F+1, C2)
    w2_aug = jnp.pad(w2_aug, ((0, 0), (0, _LANE - C2)))               # (K*F+1, 128)

    def kernel(x_ref, w1_ref, w2_ref, o_ref):
        # x_ref : (NR, KCP)      im2col of the input, bias column folded in
        # w1_ref: (KCP, F)       conv1 weight + bias row
        # w2_ref: (K*F+1, 128)   conv2 weight taps + bias row, zeros past channel C2
        # o_ref : (LOUT, 128)    lane-dense batch-folded output slab
        # conv1 + bias: one MXU push over the whole folded batch.
        h = jnp.dot(x_ref[...], w1_ref[...], preferred_element_type=jnp.float32)
        # ELU(alpha=1): tanh(hm/2)*(exp(hm)+1) == expm1(hm); hm = min(h, 0) keeps
        # the discarded branch finite.  Pad rows are exactly 0 and stay 0, which
        # is precisely conv2's zero padding of the hidden.
        hm = jnp.minimum(h, 0.0)
        h = jnp.where(h > 0, h, jnp.tanh(hm * 0.5) * (jnp.exp(hm) + 1.0))
        # Dropout: identity (eval mode).
        # conv2: K sliding-window tap matmuls over the batch-folded hidden.
        out = jnp.dot(h[0:LOUT, :], w2_ref[0:F, :],
                      preferred_element_type=jnp.float32)
        for k in range(1, K):
            out = out + jnp.dot(h[k:k + LOUT, :], w2_ref[k * F:(k + 1) * F, :],
                                preferred_element_type=jnp.float32)
        out = out + w2_ref[K * F:K * F + 1, :]                        # + b2
        o_ref[...] = out.astype(o_ref.dtype)

    cost = pl.CostEstimate(
        flops=2 * NR * KCP * F + 2 * K * LOUT * F * _LANE,
        transcendentals=2 * NR * F,
        bytes_accessed=4 * (NR * KCP + KCP * F + (K * F + 1) * _LANE + LOUT * _LANE),
    )

    out_slab = pl.pallas_call(
        kernel,
        out_shape=jax.ShapeDtypeStruct((LOUT, _LANE), x.dtype),
        grid_spec=pltpu.PrefetchScalarGridSpec(
            num_scalar_prefetch=0,
            grid=(1,),                                   # single step on every chip
            in_specs=[
                pl.BlockSpec((NR, KCP), lambda n: (0, 0)),
                pl.BlockSpec((KCP, F), lambda n: (0, 0)),
                pl.BlockSpec((K * F + 1, _LANE), lambda n: (0, 0)),
            ],
            out_specs=pl.BlockSpec((LOUT, _LANE), lambda n: (0, 0)),
        ),
        compiler_params=pltpu.CompilerParams(
            dimension_semantics=("arbitrary",)),
        cost_estimate=cost,
    )(xcols, w1_aug, w2_aug)

    # Valid rows of the folded slab are [n*L1p, n*L1p + L2) for each batch n.
    out_full = jnp.pad(out_slab, ((0, NR - LOUT), (0, 0))).reshape(N, L1p, _LANE)
    out = out_full[:, :L2, :C2]                         # (N, L2, C2)
    return jnp.squeeze(jnp.transpose(out, (0, 2, 1)))   # PyTorch NCL + torch.squeeze


def _reference_forward(x, w1, b1, w2, b2, *, padding):
    """Pure-JAX reference (lax conv) mirroring the PyTorch module in eval mode."""
    dn = ("NCH", "OIH", "NCH")
    h = jax.lax.conv_general_dilated(
        x, w1, window_strides=(1,), padding=[(padding, padding)],
        dimension_numbers=dn) + b1[None, :, None]
    h = jnp.where(h > 0, h, jnp.expm1(h))          # ELU(alpha=1)
    y = jax.lax.conv_general_dilated(
        h, w2, window_strides=(1,), padding=[(padding, padding)],
        dimension_numbers=dn) + b2[None, :, None]
    return jnp.squeeze(y)


if __name__ == "__main__":
    # Module hyperparameters (stride=1 as implemented by the kernel).
    N, C_IN, L = 2, 4, 16
    FEAT = 32
    K, STRIDE, PAD, DROPOUT = 3, 1, 1, 0.25   # dropout inert in eval mode

    key = jax.random.PRNGKey(0)
    kx, kw1, kb1, kw2, kb2 = jax.random.split(key, 5)

    x = jax.random.normal(kx, (N, C_IN, L), dtype=jnp.float32)
    # PyTorch Conv1d weight layout: (out_channels, in_channels, kernel_size)
    w1 = jax.random.normal(kw1, (FEAT, C_IN, K), dtype=jnp.float32) * 0.1
    b1 = jax.random.normal(kb1, (FEAT,), dtype=jnp.float32) * 0.1
    w2 = jax.random.normal(kw2, (3, FEAT, K), dtype=jnp.float32) * 0.1
    b2 = jax.random.normal(kb2, (3,), dtype=jnp.float32) * 0.1

    y = cnn2layers_forward(x, w1, b1, w2, b2, stride=STRIDE, padding=PAD)
    y = jax.block_until_ready(y)

    y_ref = _reference_forward(x, w1, b1, w2, b2, padding=PAD)
    assert y.shape == (N, 3, L), y.shape
    assert jnp.allclose(y, y_ref, atol=1e-4, rtol=1e-4), "mismatch vs reference"

    print("KERNEL_OK")
</pallas_src>

<mosaic_0001>
module attributes {stable_mosaic.version = 11 : i64} {
  func.func @kernel(%arg0: i32, %arg1: memref<36x16xf32, #tpu.memory_space<vmem>>, %arg2: memref<16x32xf32, #tpu.memory_space<vmem>>, %arg3: memref<97x128xf32, #tpu.memory_space<vmem>>, %arg4: memref<34x128xf32, #tpu.memory_space<vmem>>) attributes {dimension_semantics = [#tpu.dimension_semantics<arbitrary>], iteration_bounds = array<i64: 1>, scalar_prefetch = 0 : i64, scratch_operands = 0 : i64, tpu.core_type = #tpu.core_type<tc>, window_params = [{pipeline_mode = #tpu.pipeline_mode<synchronous>, transform_indices = @transform_0, window_bounds = array<i64: 36, 16>}, {pipeline_mode = #tpu.pipeline_mode<synchronous>, transform_indices = @transform_1, window_bounds = array<i64: 16, 32>}, {pipeline_mode = #tpu.pipeline_mode<synchronous>, transform_indices = @transform_2, window_bounds = array<i64: 97, 128>}, {pipeline_mode = #tpu.pipeline_mode<synchronous>, transform_indices = @transform_3, window_bounds = array<i64: 34, 128>}]} {
    %c0 = arith.constant 0 : index
    %c0_0 = arith.constant 0 : index
    %0 = vector.load %arg1[%c0, %c0_0] : memref<36x16xf32, #tpu.memory_space<vmem>>, vector<36x16xf32>
    %c0_1 = arith.constant 0 : index
    %c0_2 = arith.constant 0 : index
    %1 = vector.load %arg2[%c0_1, %c0_2] : memref<16x32xf32, #tpu.memory_space<vmem>>, vector<16x32xf32>
    %cst = arith.constant dense<0.000000e+00> : vector<36x32xf32>
    %2 = tpu.matmul %0, %1, %cst {dimension_numbers = #tpu.dot_dimension_numbers<[1], [0], [0], [1], [0, 0, 1, 1], [], []>} : vector<36x16xf32>, vector<16x32xf32>, vector<36x32xf32> -> vector<36x32xf32>
    %cst_3 = arith.constant 0.000000e+00 : f32
    %3 = vector.broadcast %cst_3 : f32 to vector<36x32xf32>
    %4 = arith.minimumf %2, %3 : vector<36x32xf32>
    %cst_4 = arith.constant 0.000000e+00 : f32
    %5 = vector.broadcast %cst_4 : f32 to vector<36x32xf32>
    %6 = arith.cmpf ogt, %2, %5 : vector<36x32xf32>
    %cst_5 = arith.constant 5.000000e-01 : f32
    %7 = vector.broadcast %cst_5 : f32 to vector<36x32xf32>
    %8 = arith.mulf %4, %7 : vector<36x32xf32>
    %9 = math.tanh %8 : vector<36x32xf32>
    %10 = math.exp %4 : vector<36x32xf32>
    %cst_6 = arith.constant 1.000000e+00 : f32
    %11 = vector.broadcast %cst_6 : f32 to vector<36x32xf32>
    %12 = arith.addf %10, %11 : vector<36x32xf32>
    %13 = arith.mulf %9, %12 : vector<36x32xf32>
    %14 = arith.select %6, %2, %13 : vector<36x32xi1>, vector<36x32xf32>
    %15 = vector.extract_strided_slice %14 {offsets = [0, 0], sizes = [34, 32], strides = [1, 1]} : vector<36x32xf32> to vector<34x32xf32>
    %c0_7 = arith.constant 0 : index
    %c0_8 = arith.constant 0 : index
    %16 = vector.load %arg3[%c0_7, %c0_8] : memref<97x128xf32, #tpu.memory_space<vmem>>, vector<32x128xf32>
    %cst_9 = arith.constant dense<0.000000e+00> : vector<34x128xf32>
    %17 = tpu.matmul %15, %16, %cst_9 {dimension_numbers = #tpu.dot_dimension_numbers<[1], [0], [0], [1], [0, 0, 1, 1], [], []>} : vector<34x32xf32>, vector<32x128xf32>, vector<34x128xf32> -> vector<34x128xf32>
    %18 = vector.extract_strided_slice %14 {offsets = [1, 0], sizes = [34, 32], strides = [1, 1]} : vector<36x32xf32> to vector<34x32xf32>
    %c32 = arith.constant 32 : index
    %c0_10 = arith.constant 0 : index
    %19 = vector.load %arg3[%c32, %c0_10] : memref<97x128xf32, #tpu.memory_space<vmem>>, vector<32x128xf32>
    %cst_11 = arith.constant dense<0.000000e+00> : vector<34x128xf32>
    %20 = tpu.matmul %18, %19, %cst_11 {dimension_numbers = #tpu.dot_dimension_numbers<[1], [0], [0], [1], [0, 0, 1, 1], [], []>} : vector<34x32xf32>, vector<32x128xf32>, vector<34x128xf32> -> vector<34x128xf32>
    %21 = arith.addf %17, %20 : vector<34x128xf32>
    %22 = vector.extract_strided_slice %14 {offsets = [2, 0], sizes = [34, 32], strides = [1, 1]} : vector<36x32xf32> to vector<34x32xf32>
    %c64 = arith.constant 64 : index
    %c0_12 = arith.constant 0 : index
    %23 = vector.load %arg3[%c64, %c0_12] : memref<97x128xf32, #tpu.memory_space<vmem>>, vector<32x128xf32>
    %cst_13 = arith.constant dense<0.000000e+00> : vector<34x128xf32>
    %24 = tpu.matmul %22, %23, %cst_13 {dimension_numbers = #tpu.dot_dimension_numbers<[1], [0], [0], [1], [0, 0, 1, 1], [], []>} : vector<34x32xf32>, vector<32x128xf32>, vector<34x128xf32> -> vector<34x128xf32>
    %25 = arith.addf %21, %24 : vector<34x128xf32>
    %c96 = arith.constant 96 : index
    %c0_14 = arith.constant 0 : index
    %26 = vector.load %arg3[%c96, %c0_14] : memref<97x128xf32, #tpu.memory_space<vmem>>, vector<1x128xf32>
    %27 = vector.broadcast %26 : vector<1x128xf32> to vector<34x128xf32>
    %28 = arith.addf %25, %27 : vector<34x128xf32>
    %c0_15 = arith.constant 0 : index
    %c0_16 = arith.constant 0 : index
    %29 = vector.load %arg4[%c0_15, %c0_16] : memref<34x128xf32, #tpu.memory_space<vmem>>, vector<34x128xf32>
    tpu.vector_store %arg4[%c0_15, %c0_16], %28 {strides = array<i32>} : memref<34x128xf32, #tpu.memory_space<vmem>>, vector<34x128xf32>,
    return
  }
  func.func @transform_0(%arg0: i32) -> (i32, i32) {
    %c0_i32 = arith.constant 0 : i32
    %c0_i32_0 = arith.constant 0 : i32
    %c0_i32_1 = arith.constant 0 : i32
    return %c0_i32, %c0_i32_0 : i32, i32
  }
  func.func @transform_1(%arg0: i32) -> (i32, i32) {
    %c0_i32 = arith.constant 0 : i32
    %c0_i32_0 = arith.constant 0 : i32
    %c0_i32_1 = arith.constant 0 : i32
    return %c0_i32, %c0_i32_0 : i32, i32
  }
  func.func @transform_2(%arg0: i32) -> (i32, i32) {
    %c0_i32 = arith.constant 0 : i32
    %c0_i32_0 = arith.constant 0 : i32
    %c0_i32_1 = arith.constant 0 : i32
    return %c0_i32, %c0_i32_0 : i32, i32
  }
  func.func @transform_3(%arg0: i32) -> (i32, i32) {
    %c0_i32 = arith.constant 0 : i32
    %c0_i32_0 = arith.constant 0 : i32
    %c0_i32_1 = arith.constant 0 : i32
    return %c0_i32, %c0_i32_0 : i32, i32
  }
}

</mosaic_0001>

<bundles_post_ra>
// kernel: cnn2layers_forward.1
= control target key start
LH: loop header
LB: loop body
LE: loop exit
PB: predicated region body
PF: predicated region fallthrough
CT: control target
= control target key end

     0   :  { %vm21_vm0 = vcmask 130048   ;;  %vm137_vm1 = vcmask 261120   ;;  %vm127_vm4 = vcmask 1046528   ;;  %vm226_vm5 = vcmask 1045504   ;;  %s458_s1 = inlined_call_operand.vmem [shape: f32[16,32], index: 1, kind: input, shape index: {}]   ;;  %s459_s0 = inlined_call_operand.vmem [shape: f32[36,16], index: 0, kind: input, shape index: {}]   ;;  %s460_s2 = inlined_call_operand.vmem [shape: f32[97,128], index: 2, kind: input, shape index: {}]   ;;  %s461_s3 = inlined_call_operand.vmem [shape: f32[34,128], index: 3, kind: output, shape index: {}]  }
   0x1   :  { %v20_v0 = vld [vmem:[%s458_s1 + $0x8] sm:$0xff]  ;;  %v19_v1 = vld [vmem:[%s458_s1] sm:$0xff]  ;;  %v16_v4 = vld [vmem:[%s459_s0 + $0x10] sm:$0xff] }
   0x2   :  { %51 = vmatpush.msra.mxu0 %v20_v0  ;;  %v14_v2 = vld [vmem:[%s459_s0] sm:$0xff]  ;;  %v15_v3 = vld [vmem:[%s459_s0 + $0x8] sm:$0xff]  ;;  %v17_v5 = vld [vmem:[%s459_s0 + $0x18] sm:$0xff] }
   0x3   :  { %v18_v6 = vld [vmem:[%s459_s0 + $0x20] sm:$0xf]  ;;  %v117_v7 = vld [vmem:[%s460_s2 + $0x18] sm:$0xff]  ;;  %v116_v8 = vld [vmem:[%s460_s2 + $0x10] sm:$0xff] }
   0x4   :  { %52 = vmatpush.msra.mxu0 %v19_v1  ;;  %202 = vmatpush.msra.mxu2 %v117_v7  ;;  %v115_v9 = vld [vmem:[%s460_s2 + $0x8] sm:$0xff]  ;;  %v114_v10 = vld [vmem:[%s460_s2] sm:$0xff]  ;;  %v121_v11 = vld [vmem:[%s460_s2 + $0x38] sm:$0xff] }
   0x5   :  { %299 = vmatmul.msk.f32.vlgmr.msra.gmra.mxu0 %vm21_vm0, %v14_v2  ;;  %v225_v12 = vld [vmem:[%s460_s2 + $0x58] sm:$0xff]  ;;  %160 = vmatpush.msra.mxu1 %v121_v11  ;;  %v120_v13 = vld [vmem:[%s460_s2 + $0x30] sm:$0xff]  ;;  %v119_v15 = vld [vmem:[%s460_s2 + $0x28] sm:$0xff] }
   0x6   :  { %203 = vmatpush.msra.mxu2 %v116_v8  ;;  %258 = vmatpush.msra.mxu3 %v225_v12  ;;  %v224_v14 = vld [vmem:[%s460_s2 + $0x50] sm:$0xff]  ;;  %v223_v16 = vld [vmem:[%s460_s2 + $0x48] sm:$0xff]  ;;  %v118_v17 = vld [vmem:[%s460_s2 + $0x20] sm:$0xff] }
   0x7   :  { %161 = vmatpush.msra.mxu1 %v120_v13  ;;  %v222_v18 = vld [vmem:[%s460_s2 + $0x40] sm:$0xff] }
   0x8   :  { %204 = vmatpush.msra.mxu2 %v115_v9  ;;  %259 = vmatpush.msra.mxu3 %v224_v14 }
   0x9   :  { %162 = vmatpush.msra.mxu1 %v119_v15 }
   0xa   :  { %205 = vmatpush.msra.mxu2 %v114_v10  ;;  %260 = vmatpush.msra.mxu3 %v223_v16 }
   0xb   :  { %163 = vmatpush.msra.mxu1 %v118_v17 }
   0xc   :  { %261 = vmatpush.msra.mxu3 %v222_v18 }
   0xd   :  { %300 = vmatmul.msk.f32.gmra.mxu0 %vm21_vm0, %v15_v3 }
  0x15   :  { %301 = vmatmul.msk.f32.gmra.mxu0 %vm21_vm0, %v16_v4 }
  0x1d   :  { %302 = vmatmul.msk.f32.gmra.mxu0 %vm21_vm0, %v17_v5 }
  0x25   :  { %303 = vmatmul.msk.f32.gmra.mxu0 %vm21_vm0, %v18_v6 }
  0x82   :  { %v54_v19 = vpop.f32.mrf.mxu0 }
  0x83   :  { %v69_v20 = vmin.f32 %v54_v19, 0.0  ;;  %vm74_vm2 = vcmp.gt.f32.partialorder %v54_v19, 0.0 }
  0x85   :  { %v89_v21 = vmul.f32 1.442695, %v69_v20  ;;  %v79_v22 = vmul.f32 0.5, %v69_v20 }
  0x87   :  { %320 = vpow2.f32 %v89_v21  ;;  %v319_v21 = vld [vmem:[%s460_s2 + $0x60] ss:$0 sm:$0xff] }
  0x88   :  { %322 = vtanh.f32 %v79_v22 }
  0x8a   :  { %v57_v23 = vpop.f32.mrf.mxu0 }
  0x8b   :  { %v70_v24 = vmin.f32 %v57_v23, 0.0  ;;  %vm75_vm3 = vcmp.gt.f32.partialorder %v57_v23, 0.0 }
  0x8d   :  { %v91_v25 = vmul.f32 1.442695, %v70_v24  ;;  %v321_v26 = vpop.eup %320  ;;  %v80_v27 = vmul.f32 0.5, %v70_v24 }
  0x8e   :  { %v99_v28 = vadd.f32 1.0, %v321_v26  ;;  %v323_v29 = vpop.eup %322 }
  0x8f   :  { %324 = vpow2.f32 %v91_v25 }
  0x90   :  { %v104_v30 = vmul.f32 %v323_v29, %v99_v28  ;;  %326 = vtanh.f32 %v80_v27 }
  0x92   :  { %v60_v31 = vpop.f32.mrf.mxu0  ;;  %v109_v33 = vsel %vm74_vm2, %v54_v19, %v104_v30 }
  0x93   :  { %v71_v32 = vmin.f32 %v60_v31, 0.0  ;;  %309 = vmatmul.msk.f32.vlgmr.msra.gmra.mxu2 %vm137_vm1, %v109_v33  ;;  %v128_v43 = vrot.slane %v109_v33, 1  ;;  %v227_v44 = vrot.slane %v109_v33, 2  ;;  %vm76_vm6 = vcmp.gt.f32.partialorder %v60_v31, 0.0 }
  0x95   :  { %v93_v34 = vmul.f32 1.442695, %v71_v32  ;;  %v325_v35 = vpop.eup %324  ;;  %v81_v36 = vmul.f32 0.5, %v71_v32 }
  0x96   :  { %v100_v37 = vadd.f32 1.0, %v325_v35  ;;  %v327_v38 = vpop.eup %326 }
  0x97   :  { %328 = vpow2.f32 %v93_v34 }
  0x98   :  { %v105_v39 = vmul.f32 %v327_v38, %v100_v37  ;;  %330 = vtanh.f32 %v81_v36 }
  0x9a   :  { %v63_v40 = vpop.f32.mrf.mxu0  ;;  %v110_v42 = vsel %vm75_vm3, %v57_v23, %v105_v39 }
  0x9b   :  { %v72_v41 = vmin.f32 %v63_v40, 0.0  ;;  %v129_v45 = vrot.slane %v110_v42, 1  ;;  %310 = vmatmul.msk.f32.gmra.mxu2 %vm137_vm1, %v110_v42  ;;  %v228_v46 = vrot.slane %v110_v42, 2  ;;  %vm77_vm7 = vcmp.gt.f32.partialorder %v63_v40, 0.0 }
  0x9d   :  { %v95_v47 = vmul.f32 1.442695, %v72_v41  ;;  %v329_v48 = vpop.eup %328  ;;  %v82_v49 = vmul.f32 0.5, %v72_v41  ;;  %v130_v50 = vsel %vm127_vm4, %v128_v43, %v129_v45  ;;  %v229_v51 = vsel %vm226_vm5, %v227_v44, %v228_v46 }
  0x9e   :  { %v101_v52 = vadd.f32 1.0, %v329_v48  ;;  %304 = vmatmul.msk.f32.vlgmr.msra.gmra.mxu1 %vm137_vm1, %v130_v50  ;;  %314 = vmatmul.msk.f32.vlgmr.msra.gmra.mxu3 %vm137_vm1, %v229_v51  ;;  %v331_v53 = vpop.eup %330 }
  0x9f   :  { %332 = vpow2.f32 %v95_v47 }
  0xa0   :  { %v106_v54 = vmul.f32 %v331_v53, %v101_v52  ;;  %334 = vtanh.f32 %v82_v49 }
  0xa2   :  { %v66_v55 = vpop.f32.mrf.mxu0  ;;  %v111_v57 = vsel %vm76_vm6, %v60_v31, %v106_v54 }
  0xa3   :  { %v73_v56 = vmin.f32 %v66_v55, 0.0  ;;  %v131_v58 = vrot.slane %v111_v57, 1  ;;  %311 = vmatmul.msk.f32.gmra.mxu2 %vm137_vm1, %v111_v57  ;;  %v230_v59 = vrot.slane %v111_v57, 2  ;;  %vm78_vm8 = vcmp.gt.f32.partialorder %v66_v55, 0.0 }
  0xa5   :  { %v97_v60 = vmul.f32 1.442695, %v73_v56  ;;  %v333_v61 = vpop.eup %332  ;;  %v83_v62 = vmul.f32 0.5, %v73_v56  ;;  %v132_v63 = vsel %vm127_vm4, %v129_v45, %v131_v58  ;;  %v231_v0 = vsel %vm226_vm5, %v228_v46, %v230_v59 }
  0xa6   :  { %v102_v1 = vadd.f32 1.0, %v333_v61  ;;  %305 = vmatmul.msk.f32.gmra.mxu1 %vm137_vm1, %v132_v63  ;;  %315 = vmatmul.msk.f32.gmra.mxu3 %vm137_vm1, %v231_v0  ;;  %v335_v2 = vpop.eup %334 }
  0xa7   :  { %336 = vpow2.f32 %v97_v60 }
  0xa8   :  { %v107_v3 = vmul.f32 %v335_v2, %v102_v1  ;;  %338 = vtanh.f32 %v83_v62 }
  0xaa   :  { %v112_v4 = vsel %vm77_vm7, %v63_v40, %v107_v3 }
  0xab   :  { %v133_v5 = vrot.slane %v112_v4, 1  ;;  %312 = vmatmul.msk.f32.gmra.mxu2 %vm137_vm1, %v112_v4  ;;  %v232_v6 = vrot.slane %v112_v4, 2 }
  0xad   :  { %v337_v7 = vpop.eup %336  ;;  %v134_v8 = vsel %vm127_vm4, %v131_v58, %v133_v5  ;;  %v233_v9 = vsel %vm226_vm5, %v230_v59, %v232_v6 }
  0xae   :  { %v103_v10 = vadd.f32 1.0, %v337_v7  ;;  %306 = vmatmul.msk.f32.gmra.mxu1 %vm137_vm1, %v134_v8  ;;  %316 = vmatmul.msk.f32.gmra.mxu3 %vm137_vm1, %v233_v9  ;;  %v339_v11 = vpop.eup %338 }
  0xb0   :  { %v108_v12 = vmul.f32 %v339_v11, %v103_v10 }
  0xb2   :  { %v113_v13 = vsel %vm78_vm8, %v66_v55, %v108_v12 }
  0xb3   :  { %v135_v14 = vrot.slane %v113_v13, 1  ;;  %313 = vmatmul.msk.f32.gmra.mxu2 %vm137_vm1, %v113_v13  ;;  %v234_v15 = vrot.slane %v113_v13, 2 }
  0xb5   :  { %v136_v16 = vsel %vm127_vm4, %v133_v5, %v135_v14  ;;  %v235_v17 = vsel %vm226_vm5, %v232_v6, %v234_v15 }
  0xb6   :  { %307 = vmatmul.msk.f32.gmra.mxu1 %vm137_vm1, %v136_v16  ;;  %317 = vmatmul.msk.f32.gmra.mxu3 %vm137_vm1, %v235_v17 }
  0xbe   :  { %308 = vmatmul.msk.f32.gmra.mxu1 %vm137_vm1, %v135_v14  ;;  %318 = vmatmul.msk.f32.gmra.mxu3 %vm137_vm1, %v234_v15 }
 0x116   :  { %v207_v18 = vpop.f32.mrf.mxu2 }
 0x11b   :  { %v165_v19 = vpop.f32.mrf.mxu1 }
 0x11c   :  { %v208_v20 = vadd.f32 %v207_v18, %v165_v19 }
 0x11e   :  { %v210_v22 = vpop.f32.mrf.mxu2 }
 0x121   :  { %v263_v23 = vpop.f32.mrf.mxu3 }
 0x122   :  { %v278_v24 = vadd.f32 %v263_v23, %v208_v20 }
 0x123   :  { %v168_v25 = vpop.f32.mrf.mxu1 }
 0x124   :  { %v285_v26 = vadd.f32 %v319_v21, %v278_v24  ;;  %v211_v27 = vadd.f32 %v210_v22, %v168_v25 }
 0x126   :  { %290 = vst [vmem:[%s461_s3] sm:$0xff] %v285_v26  ;;  %v213_v30 = vpop.f32.mrf.mxu2 }
 0x129   :  { %v266_v28 = vpop.f32.mrf.mxu3 }
 0x12a   :  { %v279_v29 = vadd.f32 %v266_v28, %v211_v27 }
 0x12b   :  { %v171_v31 = vpop.f32.mrf.mxu1 }
 0x12c   :  { %v286_v32 = vadd.f32 %v319_v21, %v279_v29  ;;  %v214_v33 = vadd.f32 %v213_v30, %v171_v31 }
 0x12e   :  { %291 = vst [vmem:[%s461_s3 + $0x8] sm:$0xff] %v286_v32  ;;  %v216_v38 = vpop.f32.mrf.mxu2 }
 0x131   :  { %v269_v34 = vpop.f32.mrf.mxu3 }
 0x132   :  { %v280_v35 = vadd.f32 %v269_v34, %v214_v33 }
 0x133   :  { %v174_v36 = vpop.f32.mrf.mxu1 }
 0x134   :  { %v287_v37 = vadd.f32 %v319_v21, %v280_v35  ;;  %v217_v39 = vadd.f32 %v216_v38, %v174_v36 }
 0x136   :  { %292 = vst [vmem:[%s461_s3 + $0x10] sm:$0xff] %v287_v37  ;;  %v219_v44 = vpop.f32.mrf.mxu2 }
 0x139   :  { %v272_v40 = vpop.f32.mrf.mxu3 }
 0x13a   :  { %v281_v41 = vadd.f32 %v272_v40, %v217_v39 }
 0x13b   :  { %v177_v43 = vpop.f32.mrf.mxu1 }
 0x13c   :  { %v288_v42 = vadd.f32 %v319_v21, %v281_v41  ;;  %v220_v45 = vadd.f32 %v219_v44, %v177_v43 }
 0x13e   :  { %293 = vst [vmem:[%s461_s3 + $0x18] sm:$0xff] %v288_v42 }
 0x141   :  { %v275_v46 = vpop.f32.mrf.mxu3 }
 0x142   :  { %v282_v47 = vadd.f32 %v275_v46, %v220_v45 }
 0x144   :  { %v289_v48 = vadd.f32 %v319_v21, %v282_v47 }
 0x146   :  { %294 = vst [vmem:[%s461_s3 + $0x20] sm:$0x3] %v289_v48 }

</bundles_post_ra>
